<compile_context>
chip_gen: v7x
topology: tpu7x:2x2x1
jax: 0.10.0
libtpu: 0.0.40
codegen_flags: <defaults>
</compile_context>

<pallas_src>
import jax
import jax.numpy as jnp
import numpy as np
from jax.experimental import pallas as pl
from jax.experimental.pallas import tpu as pltpu


def _round_up(x, m):
    return -(-x // m) * m


def _vmem_budget():
    """(working-set budget bytes, vmem_limit_bytes for CompilerParams)."""
    try:
        cap = pltpu.get_tpu_info().vmem_capacity_bytes
    except Exception:
        cap = 64 << 20  # conservative fallback (v7x-sized VMEM)
    # v5e/v6e (128 MiB physical) -> 64 MiB scoped limit; v7x (64 MiB) -> 32 MiB.
    limit = int(min(64 << 20, max(32 << 20, cap // 2)))
    budget = (limit * 3) // 4  # headroom for Mosaic internal scratch
    return budget, limit


def _num_tensorcores():
    """TensorCores sharing the grid via 'parallel' dimension_semantics."""
    try:
        kind = jax.devices()[0].device_kind.lower()
    except Exception:
        return 2
    if "v5e" in kind or "v5 lite" in kind or "v6" in kind:
        return 1          # single TensorCore per chip
    return 2              # v7x / megacore generations (and safe default)


def lagged_reg_kernel(w_ref, x_ref, o_ref):
    # w_ref: (tile_s, C)    im2col'd conv weights with the bias (alpha +
    #                       covariate-MLP output) folded in as an extra column,
    #                       C = units*K + 1.
    # x_ref: (C, tile_t)    unfolded (im2col) input time block + trailing
    #                       ones-row that picks up the bias column.
    # o_ref: (tile_s, tile_t)
    o_ref[...] = jnp.dot(
        w_ref[...], x_ref[...], preferred_element_type=jnp.float32
    ).astype(o_ref.dtype)


def lagged_spatial_regression(inputs, kernel, alpha, covs, w1, b1, w2,
                              *, nrows, ncols,
                              compute_dtype=jnp.bfloat16,
                              out_dtype=jnp.float32,
                              tile_s_max=1024, tile_t_max=2048):
    units, T = inputs.shape
    K = kernel.shape[-1]
    T_out = T - K + 1
    S = nrows * ncols
    UK = units * K
    C = UK + 1  # contraction length with the bias folded in

    # ---- one-time wrapper-side prep (plain JAX) -----------------------------
    # weights: w2d[s, u*K + l] = kernel[r, c, u, l]
    w2d = kernel.reshape(S, UK)
    # time-independent bias: alpha + cov_nn(covariates), shape (S, 1)
    nc = covs.shape[-1]
    h = jnp.tanh(covs.reshape(S, nc) @ w1 + b1.reshape(1, nc))
    bias = (alpha.reshape(S, 1) + h @ w2).astype(jnp.float32)
    # unfolded input: x_unf[u*K + l, t] = inputs[u, t + l]   (valid cross-corr)
    x_unf = jnp.stack([inputs[:, l:l + T_out] for l in range(K)], axis=1)
    x_unf = x_unf.reshape(UK, T_out)

    # fold bias into the contraction: w gets a bias column, x gets a ones-row
    w_aug = jnp.concatenate([w2d, bias], axis=1).astype(compute_dtype)       # (S, C)
    x_aug = jnp.concatenate(
        [x_unf, jnp.ones((1, T_out), x_unf.dtype)], axis=0).astype(compute_dtype)  # (C, T_out)

    # ---- tiling (HBM-writeback bound: big, lane-dense output tiles) ---------
    vmem_budget, vmem_limit = _vmem_budget()
    in_bytes = jnp.dtype(compute_dtype).itemsize
    out_bytes = jnp.dtype(out_dtype).itemsize
    c_sub = _round_up(C, 16)    # sublane padding of the x block (bf16 packs 16)
    c_lane = _round_up(C, 128)  # lane padding of the w block

    def vmem_est(ts, tt):       # double-buffered working set
        return 2 * (ts * tt * out_bytes + c_sub * tt * in_bytes
                    + ts * c_lane * in_bytes)

    tile_t = min(tile_t_max, _round_up(max(T_out, 1), 128))
    tile_s = min(tile_s_max, _round_up(S, 8))
    while vmem_est(tile_s, tile_t) > vmem_budget:
        if tile_t >= tile_s and tile_t > 128:
            tile_t = _round_up(tile_t // 2, 128)
        elif tile_s > 8:
            tile_s = _round_up(tile_s // 2, 8)
        else:
            break

    # If the grid would collapse to a single step, split S so both TensorCores
    # of a 2-TC chip get work.  Skipped on single-TC v5e / v6e (where it would
    # only add a grid step and halve the output-store tile).
    if (_round_up(S, tile_s) // tile_s) * (_round_up(T_out, tile_t) // tile_t) == 1 \
            and _num_tensorcores() >= 2 and tile_s > 8:
        tile_s = _round_up(tile_s // 2, 8)

    S_pad = _round_up(S, tile_s)
    T_pad = _round_up(T_out, tile_t)
    if S_pad != S:
        w_aug = jnp.pad(w_aug, ((0, S_pad - S), (0, 0)))
    if T_pad != T_out:
        x_aug = jnp.pad(x_aug, ((0, 0), (0, T_pad - T_out)))

    # Grid: S-tiles outer, time innermost.  The weight/bias tile's block index
    # (i, 0) is constant along t, so it stays resident across the time sweep.
    grid = (S_pad // tile_s, T_pad // tile_t)

    out = pl.pallas_call(
        lagged_reg_kernel,
        out_shape=jax.ShapeDtypeStruct((S_pad, T_pad), out_dtype),
        grid_spec=pltpu.PrefetchScalarGridSpec(
            num_scalar_prefetch=0,
            grid=grid,
            in_specs=[
                pl.BlockSpec((tile_s, C), lambda i, t: (i, 0)),   # weights+bias col
                pl.BlockSpec((C, tile_t), lambda i, t: (0, t)),   # unfolded input + ones
            ],
            out_specs=pl.BlockSpec((tile_s, tile_t), lambda i, t: (i, t)),
        ),
        compiler_params=pltpu.CompilerParams(
            dimension_semantics=("parallel", "parallel"),
            vmem_limit_bytes=vmem_limit),
    )(w_aug, x_aug)

    return out[:S, :T_out].reshape(nrows, ncols, T_out)


def reference(inputs, kernel, alpha, covs, w1, b1, w2, nrows, ncols):
    """Pure-JAX reference matching the PyTorch forward semantics."""
    units, T = inputs.shape
    K = kernel.shape[-1]
    T_out = T - K + 1
    S = nrows * ncols
    x_unf = jnp.stack([inputs[:, l:l + T_out] for l in range(K)], axis=1)
    kern_r = kernel.reshape(S, units, K)
    out = jnp.einsum('suk,ukt->st', kern_r, x_unf,
                     precision=jax.lax.Precision.HIGHEST) + alpha.reshape(S, 1)
    h = jnp.tanh(covs.reshape(S, -1) @ w1 + b1.reshape(1, -1))
    out = out + h @ w2
    return out.reshape(nrows, ncols, T_out)


if __name__ == "__main__":
    nrows, ncols, units, K = 8, 16, 8, 4
    T = 131            # -> T_out = 128
    nc = 8

    key = jax.random.PRNGKey(0)
    k1, k2, k3, k4, k5, k6 = jax.random.split(key, 6)

    # Module parameters (deterministic, shapes per __init__):
    # positive_kernel=False -> kernel = randn(nrows, ncols, units, K).exp()
    kernel = jnp.exp(jax.random.normal(k1, (nrows, ncols, units, K), jnp.float32))
    # use_bias=True -> alpha = zeros(nrows, ncols)
    alpha = jnp.zeros((nrows, ncols), jnp.float32)
    # cov_nn = Linear(nc, nc) -> Tanh -> Linear(nc, 1, bias=False)
    w1 = 0.1 * jax.random.normal(k2, (nc, nc), jnp.float32)
    b1 = 0.1 * jax.random.normal(k3, (nc,), jnp.float32)
    w2 = 0.1 * jax.random.normal(k4, (nc, 1), jnp.float32)
    covs = jax.random.normal(k5, (nrows, ncols, nc), jnp.float32)

    inputs = jax.random.normal(k6, (units, T), jnp.float32)

    ref = reference(inputs, kernel, alpha, covs, w1, b1, w2, nrows, ncols)

    # 1) semantic check: f32 streams, tight tolerance against HIGHEST reference
    out_f32 = jax.block_until_ready(
        lagged_spatial_regression(inputs, kernel, alpha, covs, w1, b1, w2,
                                  nrows=nrows, ncols=ncols,
                                  compute_dtype=jnp.float32))
    assert out_f32.shape == (nrows, ncols, T - K + 1)
    np.testing.assert_allclose(np.asarray(out_f32), np.asarray(ref),
                               rtol=5e-3, atol=5e-3)

    # 2) performance default: bf16 input/weight streams, f32 MXU accumulation.
    #    Looser tolerance reflects bf16 rounding of exp(randn)-scale weights;
    #    kernel semantics are already validated by the f32 check above.
    out_bf16 = jax.block_until_ready(
        lagged_spatial_regression(inputs, kernel, alpha, covs, w1, b1, w2,
                                  nrows=nrows, ncols=ncols))
    assert out_bf16.shape == (nrows, ncols, T - K + 1)
    np.testing.assert_allclose(np.asarray(out_bf16), np.asarray(ref),
                               rtol=3e-2, atol=3e-1)

    print("KERNEL_OK")
</pallas_src>

<mosaic_0001>
module attributes {stable_mosaic.version = 11 : i64} {
  func.func @lagged_reg_kernel(%arg0: i32, %arg1: i32, %arg2: memref<64x33xf32, #tpu.memory_space<vmem>>, %arg3: memref<33x128xf32, #tpu.memory_space<vmem>>, %arg4: memref<64x128xf32, #tpu.memory_space<vmem>>) attributes {dimension_semantics = [#tpu.dimension_semantics<parallel>, #tpu.dimension_semantics<parallel>], iteration_bounds = array<i64: 2, 1>, scalar_prefetch = 0 : i64, scratch_operands = 0 : i64, tpu.core_type = #tpu.core_type<tc>, window_params = [{transform_indices = @transform_0, window_bounds = array<i64: 64, 33>}, {transform_indices = @transform_1, window_bounds = array<i64: 33, 128>}, {transform_indices = @transform_2, window_bounds = array<i64: 64, 128>}]} {
    %c0 = arith.constant 0 : index
    %c0_0 = arith.constant 0 : index
    %0 = vector.load %arg2[%c0, %c0_0] : memref<64x33xf32, #tpu.memory_space<vmem>>, vector<64x33xf32>
    %c0_1 = arith.constant 0 : index
    %c0_2 = arith.constant 0 : index
    %1 = vector.load %arg3[%c0_1, %c0_2] : memref<33x128xf32, #tpu.memory_space<vmem>>, vector<33x128xf32>
    %cst = arith.constant dense<0.000000e+00> : vector<64x128xf32>
    %2 = tpu.matmul %0, %1, %cst {dimension_numbers = #tpu.dot_dimension_numbers<[1], [0], [0], [1], [0, 0, 1, 1], [], []>} : vector<64x33xf32>, vector<33x128xf32>, vector<64x128xf32> -> vector<64x128xf32>
    %c0_3 = arith.constant 0 : index
    %c0_4 = arith.constant 0 : index
    %3 = vector.load %arg4[%c0_3, %c0_4] : memref<64x128xf32, #tpu.memory_space<vmem>>, vector<64x128xf32>
    tpu.vector_store %arg4[%c0_3, %c0_4], %2 {strides = array<i32>} : memref<64x128xf32, #tpu.memory_space<vmem>>, vector<64x128xf32>,
    return
  }
  func.func @transform_0(%arg0: i32, %arg1: i32) -> (i32, i32) {
    %c0_i32 = arith.constant 0 : i32
    %c0_i32_0 = arith.constant 0 : i32
    return %arg0, %c0_i32 : i32, i32
  }
  func.func @transform_1(%arg0: i32, %arg1: i32) -> (i32, i32) {
    %c0_i32 = arith.constant 0 : i32
    %c0_i32_0 = arith.constant 0 : i32
    return %c0_i32, %arg1 : i32, i32
  }
  func.func @transform_2(%arg0: i32, %arg1: i32) -> (i32, i32) {
    %c0_i32 = arith.constant 0 : i32
    return %arg0, %arg1 : i32, i32
  }
}

</mosaic_0001>

<bundles_post_ra>
// kernel: tpu_custom_call.1
= control target key start
LH: loop header
LB: loop body
LE: loop exit
PB: predicated region body
PF: predicated region fallthrough
CT: control target
= control target key end

     0   :  { %7 = vsyncpa [#allocation3], 0  ;;  %s802_s0 = inlined_call_operand.vmem [shape: f32[128,33], index: 0, kind: input, shape index: {}]   ;;  %s803_s1 = inlined_call_operand.vmem [shape: f32[33,128], index: 1, kind: input, shape index: {}]   ;;  %s804_s2 = inlined_call_operand.hbm [shape: f32[128,128], index: 2, kind: output, shape index: {}]  }
   0x1   :  { %9 = vsyncpa [#allocation3 + $0x1], 0  ;;  %s661_s9 = smov 0   ;;  %s663_s10 = smov 0  }
   0x2   :  { %s665_s11 = smov 0   ;;  %s667_s12 = smov 0  }
   0x3   :  { %s669_s13 = smov 0   ;;  %s671_s14 = smov 0  }
   0x4 LB: > { %s433_s15 = sadd.s32 4294967295, %s641_s14   ;;  %s434_s16 = sadd.s32 4294967294, %s641_s14   ;;  %s641_s14 = sphi %s671_s14, %s15_s14   ;;  %s637_s13 = sphi %s669_s13, %s811_s13   ;;  %s633_s12 = sphi %s667_s12, %s810_s12   ;;  %s629_s11 = sphi %s665_s11, %s809_s11   ;;  %s625_s10 = sphi %s663_s10, %s808_s10   ;;  %s621_s9 = sphi %s661_s9, %s807_s9  }
   0x5   : > { %s27_s17 = sadd.s32 1, %s637_s13  ;;  %s88_s18 = sadd.s32 1, %s629_s11 }
   0x6   : > { %p29_p0 = scmp.ge.s32.totalorder %s27_s17, 2  ;;  %p98_p1 = scmp.ne.s32.totalorder %s629_s11, %s625_s10 }
   0x7   : > { %p99_p2 = scmp.eq.s32.totalorder %s433_s15, 1  ;;  %p104_p3 = scmp.ne.s32.totalorder %s625_s10, %s621_s9 }
   0x8   : > { %s813_s17 = smov (%p29_p0, %s27_s17), 0  ;;  %p105_p5 = scmp.eq.s32.totalorder %s434_s16, 1 }
   0x9   : > { %p701_p4 = por %p99_p2, %p98_p1  ;;  %s83_s20 = ssub.s32 %s637_s13, %s813_s17 }
   0xa   : > { %p438_p6 = scmp.ge.s32.totalorder %s641_s14, 1  ;;  %p86_p7 = scmp.eq.s32.totalorder %s83_s20, 0 }
   0xb   : > { %p708_p8 = por %p105_p5, %p104_p3  ;;  %p139_p9 = scmp.lt.s32.totalorder %s641_s14, 3 }
   0xc   : > { %s714_s22 = scalar_select %p86_p7, %s629_s11, %s88_s18  }
   0xd   : > { %p140_p10 = pnand %p438_p6, %p139_p9 }
   0xe   : > { %v184_v0 = vld [vmem:[%s803_s1] sm:$0xff] (!%p140_p10)  ;;  %v185_v1 = vld [vmem:[%s803_s1 + $0x8] sm:$0xff] (!%p140_p10)  ;;  %v186_v2 = vld [vmem:[%s803_s1 + $0x10] sm:$0xff] (!%p140_p10)  ;;  %s440_s29 = sshll.u32 (!%p140_p10), %s633_s12, 3  ;;  %vm214_vm0 = vcmask (!%p140_p10), 1040384   ;;  %vm189_vm1 = vcmask (!%p140_p10), 269312  }
   0xf   : > { %143 = sbr.rel (%p140_p10) target bundleno = 260 (0x104), region = 28  ;;  %v492_v3 = vpack.c.bf16 (!%p140_p10), %v185_v1, %v184_v0  ;;  %v187_v4 = vld [vmem:[%s803_s1 + $0x18] sm:$0xff] (!%p140_p10)  ;;  %p166_p11 = scmp.lt.s32.totalorder (!%p140_p10), %s440_s29, 15  ;;  %v188_v6 = vld [vmem:[%s803_s1 + $0x20] sm:$0x1] (!%p140_p10) }
  0x10   : > { %v496_v5 = vpack.c.bf16 (!%p140_p10), %v187_v4, %v186_v2  ;;  %s162_s16 = sand.u32 (!%p140_p10), 1, %s625_s10   ;;  %s456_s24 = sshll.u32 (!%p140_p10), %s633_s12, 10 }
  0x11   : > { %493 = vmatprep.subr.bf16.mxu0 (!%p140_p10), %v492_v3  ;;  %500 = vmatprep.subr.bf16.mxu1 (!%p140_p10), %v492_v3  ;;  %s439_s18 = sshll.u32 (!%p140_p10), %s162_s16, 6  ;;  %s754_s27 = scalar_lea.hbm (!%p140_p10), %s804_s2, %s456_s24 }
  0x12   : > { %495 = vmatpush3.bf16.msra.mxu0 (!%p140_p10), %v492_v3  ;;  %503 = vmatpush3.bf16.msra.mxu1 (!%p140_p10), %v492_v3  ;;  %s164_s20 = scalar_lea.vmem (!%p140_p10), [#allocation2], %s439_s18  ;;  %s756_s12 = scalar_lea.sflag (!%p140_p10), [#allocation3], %s162_s16 }
  0x13   : > { %497 = vmatprep.subr.bf16.mxu0 (!%p140_p10), %v496_v5  ;;  %501 = vmatprep.subr.bf16.mxu1 (!%p140_p10), %v496_v5  ;;  %s346_s23 = sshll.u32 (!%p140_p10), %s164_s20, 4  ;;  %s749_s23 = int_to_ptr.vmem [resolvable:$true] %s346_s23 }
  0x14   : > { %s563_s28 = scalar_lea.vmem (!%p140_p10), %s749_s23, 1024 }
  0x15   : > { %p564_p12 = scmp.ne.s32.totalorder (!%p140_p10), %s749_s23, %s563_s28 }
  0x16   : > { %s815_s29 = smov (!%p166_p11, %s440_s29), 15  ;;  %499 = vmatpush3.bf16.msra.mxu0 %v496_v5  ;;  %504 = vmatpush3.bf16.msra.mxu1 %v496_v5 }
  0x17   : > { %s441_s4 = sshll.u32 %s815_s29, 3  ;;  %478 = vmatprep.subr.msk.mxu0 %vm214_vm0, %v188_v6  ;;  %502 = vmatprep.subr.msk.mxu1 %vm214_vm0, %v188_v6  ;;  %p565_p13 = pnand %p564_p12, %p701_p4 }
  0x18   : > { %s169_s15 = scalar_lea.vmem %s802_s0, %s441_s4  ;;  %s643_s29 = smov [#allocation2]  }
  0x19   : > { %v176_v7 = vld [vmem:[%s169_s15] sm:$0xff]  ;;  %v177_v9 = vld [vmem:[%s169_s15 + $0x8] sm:$0xff]  ;;  %v178_v11 = vld [vmem:[%s169_s15 + $0x10] sm:$0xff]  ;;  %p566_p0 = pneg %p565_p13  ;;  %s567_s30 = sshll.u32 %s643_s29, 4  ;;  %s568_s30 = int_to_ptr.vmem [resolvable:$false] %s567_s30 }
  0x1a   : > { %v180_v8 = vld [vmem:[%s169_s15 + $0x20] sm:$0xff]  ;;  %480 = vmatprep.mubr.msk.f32.mxu0 %vm189_vm1, %v176_v7  ;;  %v181_v10 = vld [vmem:[%s169_s15 + $0x28] sm:$0xff]  ;;  %v182_v12 = vld [vmem:[%s169_s15 + $0x30] sm:$0xff]  ;;  %479 = vmatpush3.msk.msra.mxu0 %vm214_vm0, %v188_v6  ;;  %s569_s3 = scalar_lea.vmem %s568_s30, 2048  ;;  %p570_p1 = scmp.lt.s32.totalorder %s749_s23, %s568_s30 }
  0x1b   : > { %486 = vmatprep.mubr.msk.f32.mxu1 %vm189_vm1, %v180_v8  ;;  %505 = vmatpush3.msk.msra.mxu1 %vm214_vm0, %v188_v6  ;;  %v179_v13 = vld [vmem:[%s169_s15 + $0x18] sm:$0xff]  ;;  %p571_p2 = scmp.lt.s32.totalorder %s569_s3, %s563_s28 }
  0x1c   : > { %481 = vmatmul.mubr.msk.f32.vlgmr.msra.gmra.mrb[0].mxu0 %vm189_vm1, %v177_v9  ;;  %487 = vmatmul.mubr.msk.f32.vlgmr.msra.gmra.mrb[0].mxu1 %vm189_vm1, %v181_v10  ;;  %v183_v14 = vld [vmem:[%s169_s15 + $0x38] sm:$0xff] }
  0x1d   : > { %483 = vmatprep.mubr.msk.f32.mxu0 %vm189_vm1, %v178_v11  ;;  %489 = vmatprep.mubr.msk.f32.mxu1 %vm189_vm1, %v182_v12  ;;  %p572_p3 = por %p571_p2, %p570_p1 }
  0x1f   : > { %p573_p5 = pnand %p572_p3, %p566_p0 }
  0x20   : > { %484 = vmatmul.mubr.msk.f32.gmra.mrb[2].mxu0 %vm189_vm1, %v179_v13  ;;  %490 = vmatmul.mubr.msk.f32.gmra.mrb[2].mxu1 %vm189_vm1, %v183_v14 }
  0xef   : > { %v482_v15 = vpop.f32.mrb[0].mxu0  ;;  %v488_v16 = vpop.f32.mrb[0].mxu1 }
  0xf0   : > { %324 = vst [vmem:[%s164_s20 + $0x8] sm:$0xff] %v482_v15  ;;  %328 = vst [vmem:[%s164_s20 + $0x28] sm:$0xff] %v488_v16  ;;  %v284_v17 = vpop.f32.mrb[1].mxu0  ;;  %v304_v18 = vpop.f32.mrb[1].mxu1 }
  0xf1   : > { %323 = vst [vmem:[%s164_s20] sm:$0xff] %v284_v17  ;;  %327 = vst [vmem:[%s164_s20 + $0x20] sm:$0xff] %v304_v18 }
  0xf3   : > { %v485_v19 = vpop.f32.mrb[2].mxu0  ;;  %v491_v20 = vpop.f32.mrb[2].mxu1 }
  0xf4   : > { %326 = vst [vmem:[%s164_s20 + $0x18] sm:$0xff] %v485_v19  ;;  %330 = vst [vmem:[%s164_s20 + $0x38] sm:$0xff] %v491_v20  ;;  %v294_v21 = vpop.f32.mrb[3].mxu0  ;;  %v314_v22 = vpop.f32.mrb[3].mxu1 }
  0xf5   : > { %325 = vst [vmem:[%s164_s20 + $0x10] sm:$0xff] %v294_v21  ;;  %329 = vst [vmem:[%s164_s20 + $0x30] sm:$0xff] %v314_v22 }
  0xf6   : > { %576 = shalt.err (!%p573_p5)
}
  0xf7   : > { %s577_s4 = scalar_lea.hbm %s754_s27, 1024  ;;  %s581_s7 = scalar_lea.hbm %s804_s2, 2048 }
  0xf8   : > { %p578_p6 = scmp.ne.s32.totalorder %s754_s27, %s577_s4  ;;  %p582_p10 = scmp.lt.u32.totalorder %s754_s27, %s804_s2 }
  0xf9   : > { %p583_p11 = scmp.lt.u32.totalorder %s581_s7, %s577_s4  ;;  %p585_p13 = scmp.lt.u32.totalorder %s577_s4, %s754_s27 }
  0xfa   : > { %p579_p7 = pnand %p578_p6, %p701_p4 }
  0xfb   : > { %p584_p12 = por %p583_p11, %p582_p10 }
  0xfc   : > { %p580_p9 = pneg %p579_p7 }
  0xfd   : > { %p586_p0 = por %p585_p13, %p584_p12 }
  0xff   : > { %p587_p1 = pnand %p586_p0, %p580_p9 }
 0x101   : > { %590 = shalt.err (!%p587_p1)
}
 0x102   : > { %s644_s16 = smov 128   ;;  %s645_s18 = smov 8  }
 0x103   : > { %506 = dma.vmem_to_hbm [thread:$0]  (%p701_p4), %s749_s23, 1024, %s754_s27, %s756_s12, %s644_s16, %s644_s16, %s645_s18  }
 0x104 PF: > { %p512_p2 = scmp.ge.s32.totalorder %s641_s14, 2  ;;  %s361_s20 = sand.u32 1, %s621_s9  }
 0x105   : > { %s362_s24 = scalar_lea.sflag [#allocation3], %s361_s20 }
 0x106   : > { %p509_p3 = pnand %p512_p2, %p708_p8 }
 0x108   : > { %616 = dma.done.wait (!%p509_p3), %s362_s24, 1024  }
 0x109   : > { %618 = vsyncadd (!%p509_p3), %s362_s24, 4294966272  ;;  %s15_s14 = sadd.s32 1, %s641_s14   ;;  %s807_s9 = smov %s625_s10 }
 0x10a   : > { %p12_p5 = scmp.ge.s32.totalorder %s15_s14, 4   ;;  %s808_s10 = smov %s629_s11 }
 0x10b   : > { %s809_s11 = smov %s714_s22  ;;  %s810_s12 = smov %s637_s13 }
 0x10c   : > { %s811_s13 = smov %s813_s17  ;;  %14 = sbr.rel (!%p12_p5) target bundleno = 4 (0x4), region = 66 }
 0x113   :  { %367 = vsyncpa [#allocation3], 1 }
 0x114   :  { %369 = vsyncpa [#allocation3 + $0x1], 1 }

</bundles_post_ra>
